<compile_context>
chip_gen: v5e
topology: v5e:2x2
jax: 0.10.0
libtpu: 0.0.40
codegen_flags: <defaults>
</compile_context>

<pallas_src>
import functools

import jax
import jax.numpy as jnp
import numpy as np
from jax.experimental import pallas as pl
from jax.experimental.pallas import tpu as pltpu


def _round_up(x, m):
    return (x + m - 1) // m * m


# ----------------------------------------------------------------------------
# Init-time helper (parameter setup, plain JAX): exp_map_SE3 for pose_noise.
# ----------------------------------------------------------------------------
def exp_map_SE3_jax(tv):
    """tv: [M, 6] (linear | angular) -> [M, 3, 4]."""
    lin = tv[:, :3]
    ang = tv[:, 3:]
    theta = jnp.linalg.norm(ang, axis=1, keepdims=True)
    theta2 = theta * theta
    theta3 = theta2 * theta
    near_zero = theta < 1e-2
    theta_nz = jnp.where(near_zero, 1.0, theta)
    theta2_nz = jnp.where(near_zero, 1.0, theta2)
    theta3_nz = jnp.where(near_zero, 1.0, theta3)
    cosine = jnp.where(near_zero, 8.0 / (4.0 + theta2) - 1.0, jnp.cos(theta))
    sine = jnp.sin(theta)
    sbt = jnp.where(near_zero, 0.5 * cosine + 0.5, sine / theta_nz)
    omc = jnp.where(near_zero, 0.5 * sbt, (1.0 - cosine) / theta2_nz)

    wwT = ang[:, :, None] * ang[:, None, :]                    # [M,3,3]
    R = omc[:, :, None] * wwT + cosine[:, :, None] * jnp.eye(3, dtype=tv.dtype)[None]
    temp = sbt * ang                                            # [M,3]
    zero = jnp.zeros_like(temp[:, 0])
    skew = jnp.stack(
        [
            jnp.stack([zero, -temp[:, 2], temp[:, 1]], axis=-1),
            jnp.stack([temp[:, 2], zero, -temp[:, 0]], axis=-1),
            jnp.stack([-temp[:, 1], temp[:, 0], zero], axis=-1),
        ],
        axis=1,
    )
    R = R + skew

    sbt_t = jnp.where(near_zero, 1.0 - theta2 / 6.0, sbt)
    omc_t = jnp.where(near_zero, 0.5 - theta2 / 24.0, omc)
    tmsbt3 = jnp.where(near_zero, 1.0 / 6.0 - theta2 / 120.0, (theta - sine) / theta3_nz)
    t = (
        sbt_t * lin
        + omc_t * jnp.cross(ang, lin)
        + tmsbt3 * (ang * jnp.sum(ang * lin, axis=1, keepdims=True))
    )
    return jnp.concatenate([R, t[:, :, None]], axis=-1)        # [M,3,4]


# ----------------------------------------------------------------------------
# Pallas kernel: exp_map_SO3xR3 + 3x4 pose composition, cameras lane-dense.
# ----------------------------------------------------------------------------
_CHUNK = 8  # sublane rows per inner chunk = exactly one f32 vreg per quantity


def _camera_opt_kernel(x_ref, pose_ref):
    """x_ref:    [18, S, 128]  rows 0:3 = lin, 3:6 = omega, 6:18 = noise pose
                               (row-major 3x4); cameras on (sublane, lane).
    pose_ref: [12, S, 128]  composed pose, row-major 3x4."""
    s_total = x_ref.shape[1]
    chunk = _CHUNK if s_total % _CHUNK == 0 else s_total
    n_chunks = s_total // chunk

    def _process(off):
        sl = pl.ds(off, chunk)
        lx, ly, lz = x_ref[0, sl, :], x_ref[1, sl, :], x_ref[2, sl, :]
        wx, wy, wz = x_ref[3, sl, :], x_ref[4, sl, :], x_ref[5, sl, :]

        theta2 = wx * wx + wy * wy + wz * wz
        theta = jnp.sqrt(theta2)
        near_zero = theta < 1e-2
        # Exact reciprocal (approx=True is too coarse for the 1e-6 tolerance);
        # inv_theta2 derived by a multiply instead of a second divide.
        inv_theta = pl.reciprocal(jnp.where(near_zero, 1.0, theta))
        inv_theta2 = inv_theta * inv_theta
        cosine = jnp.where(
            near_zero,
            1.0 - theta2 * (0.5 - theta2 * (1.0 / 24.0)),   # cos Taylor, no divide
            jnp.cos(theta),
        )
        sbt = jnp.where(near_zero, 0.5 * cosine + 0.5, jnp.sin(theta) * inv_theta)
        omc = jnp.where(near_zero, 0.5 * sbt, (1.0 - cosine) * inv_theta2)

        sx, sy, sz = sbt * wx, sbt * wy, sbt * wz
        ox, oy, oz = omc * wx, omc * wy, omc * wz        # shared products

        # Rotation R_A of exp_map_SO3xR3 (translation t_A = lin).
        r00 = ox * wx + cosine
        r01 = ox * wy - sz
        r02 = ox * wz + sy
        r10 = oy * wx + sz
        r11 = oy * wy + cosine
        r12 = oy * wz - sx
        r20 = oz * wx - sy
        r21 = oz * wy + sx
        r22 = oz * wz + cosine

        # multiply(A, B): R = R_A @ R_B ; t = t_A + R_A @ t_B.
        # Process noise pose B column by column (3 loads -> 3 full-slab stores)
        # to keep live vregs low; every store is a dense unmasked vst.
        n0, n1, n2 = x_ref[6, sl, :], x_ref[10, sl, :], x_ref[14, sl, :]
        pose_ref[0, sl, :] = r00 * n0 + r01 * n1 + r02 * n2
        pose_ref[4, sl, :] = r10 * n0 + r11 * n1 + r12 * n2
        pose_ref[8, sl, :] = r20 * n0 + r21 * n1 + r22 * n2

        n0, n1, n2 = x_ref[7, sl, :], x_ref[11, sl, :], x_ref[15, sl, :]
        pose_ref[1, sl, :] = r00 * n0 + r01 * n1 + r02 * n2
        pose_ref[5, sl, :] = r10 * n0 + r11 * n1 + r12 * n2
        pose_ref[9, sl, :] = r20 * n0 + r21 * n1 + r22 * n2

        n0, n1, n2 = x_ref[8, sl, :], x_ref[12, sl, :], x_ref[16, sl, :]
        pose_ref[2, sl, :] = r00 * n0 + r01 * n1 + r02 * n2
        pose_ref[6, sl, :] = r10 * n0 + r11 * n1 + r12 * n2
        pose_ref[10, sl, :] = r20 * n0 + r21 * n1 + r22 * n2

        n0, n1, n2 = x_ref[9, sl, :], x_ref[13, sl, :], x_ref[17, sl, :]
        pose_ref[3, sl, :] = lx + r00 * n0 + r01 * n1 + r02 * n2
        pose_ref[7, sl, :] = ly + r10 * n0 + r11 * n1 + r12 * n2
        pose_ref[11, sl, :] = lz + r20 * n0 + r21 * n1 + r22 * n2

    if n_chunks == 1:
        _process(0)
    else:
        def body(c, carry):
            _process(pl.multiple_of(c * chunk, chunk))
            return carry
        jax.lax.fori_loop(0, n_chunks, body, 0, unroll=True)


def camera_optimizer_forward(indices, pose_adjustment, pose_noise,
                             distortion_adjustment, intrinsic_adjustment,
                             *, max_tile_groups=64):
    """Equivalent of CameraOptimizer.forward with mode='SO3xR3',
    distortion_opt='full', intrinsic_opt='full', pose_noise enabled."""
    n = indices.shape[0]
    lanes = 128

    # Distortion / intrinsics are pure gathers with no compute -> returned
    # directly from XLA (no kernel copies).
    dist = distortion_adjustment[indices, :].astype(jnp.float32)          # [N,6]
    ints = intrinsic_adjustment[indices, :].astype(jnp.float32)           # [N,2]

    if n == 0:  # empty batch guard (zero-size grid is not worth relying on)
        return jnp.zeros((0, 3, 4), jnp.float32), dist, ints

    # Pre-transpose the SMALL parameter arrays (cost ~ num_cameras) and gather
    # along the minor axis -> packed lane-dense [18, N] operand with no
    # transpose of the gathered [N,18] data.
    num_cameras = pose_adjustment.shape[0]
    params_t = jnp.concatenate(
        [pose_adjustment.astype(jnp.float32).T,                            # [6,C]
         pose_noise.astype(jnp.float32).reshape(num_cameras, 12).T],       # [12,C]
        axis=0)                                                            # [18,C]
    x = jnp.take(params_t, indices, axis=1)                                # [18,N]

    # Tile selection: cameras grouped into 128-lane columns; S sublane rows per
    # tile.  S must be a multiple of 8 (or equal the full extent); keep >= 2
    # grid steps when possible so both v7x TensorCores get work.  VMEM is a
    # non-issue even at S=64 (in+out blocks ~1 MiB double-buffered).
    nb = pl.cdiv(n, lanes)
    if nb <= 8:
        s = nb
    else:
        s_half = max(8, (nb // 2) // 8 * 8)
        s = min(max_tile_groups, s_half)
    nb_pad = _round_up(nb, s)
    n_pad = nb_pad * lanes
    if n_pad != n:
        x = jnp.pad(x, ((0, 0), (0, n_pad - n)))
    x3 = x.reshape(18, nb_pad, lanes)            # free reshape (splits minor dim)

    pose3 = pl.pallas_call(
        _camera_opt_kernel,
        grid=(nb_pad // s,),
        in_specs=[pl.BlockSpec((18, s, lanes), lambda i: (0, i, 0))],
        out_specs=pl.BlockSpec((12, s, lanes), lambda i: (0, i, 0)),
        out_shape=jax.ShapeDtypeStruct((12, nb_pad, lanes), jnp.float32),
        compiler_params=pltpu.CompilerParams(dimension_semantics=("parallel",)),
        cost_estimate=pl.CostEstimate(
            flops=110 * n_pad,
            transcendentals=5 * n_pad,
            bytes_accessed=(18 + 12) * 4 * n_pad),
    )(x3)

    # TODO(synk): downstream consumers that accept SoA poses ([12, N]) could
    # skip this final AoS transpose (a full extra HBM pass over the output);
    # kept here to match the module's [N, 3, 4] return layout.
    pose = pose3.reshape(12, n_pad)[:, :n].T.reshape(n, 3, 4)
    return pose, dist, ints


# ----------------------------------------------------------------------------
# Pure-JAX reference for validation.
# ----------------------------------------------------------------------------
def exp_map_SO3xR3_ref(tv):
    lin = tv[:, :3]
    ang = tv[:, 3:]
    theta = jnp.linalg.norm(ang, axis=1, keepdims=True)
    theta2 = theta * theta
    near_zero = theta < 1e-2
    theta_nz = jnp.where(near_zero, 1.0, theta)
    theta2_nz = jnp.where(near_zero, 1.0, theta2)
    cosine = jnp.where(near_zero, 8.0 / (4.0 + theta2) - 1.0, jnp.cos(theta))
    sbt = jnp.where(near_zero, 0.5 * cosine + 0.5, jnp.sin(theta) / theta_nz)
    omc = jnp.where(near_zero, 0.5 * sbt, (1.0 - cosine) / theta2_nz)
    wwT = ang[:, :, None] * ang[:, None, :]
    R = omc[:, :, None] * wwT + cosine[:, :, None] * jnp.eye(3, dtype=tv.dtype)[None]
    temp = sbt * ang
    zero = jnp.zeros_like(temp[:, 0])
    skew = jnp.stack(
        [
            jnp.stack([zero, -temp[:, 2], temp[:, 1]], axis=-1),
            jnp.stack([temp[:, 2], zero, -temp[:, 0]], axis=-1),
            jnp.stack([-temp[:, 1], temp[:, 0], zero], axis=-1),
        ],
        axis=1,
    )
    R = R + skew
    return jnp.concatenate([R, lin[:, :, None]], axis=-1)


def multiply_ref(pose_a, pose_b):
    R1, t1 = pose_a[..., :3], pose_a[..., 3:]
    R2, t2 = pose_b[..., :3], pose_b[..., 3:]
    R = R1 @ R2
    t = t1 + R1 @ t2
    return jnp.concatenate([R, t], axis=-1)


def _run_case(key, num_cameras, indices, position_noise_std=0.02, orientation_noise_std=0.02):
    k1, k2, k3, k4 = jax.random.split(key, 4)
    pose_adjustment = 0.1 * jax.random.normal(k1, (num_cameras, 6), dtype=jnp.float32)
    distortion_adjustment = 0.01 * jax.random.normal(k2, (num_cameras, 6), dtype=jnp.float32)
    intrinsic_adjustment = 0.01 * jax.random.normal(k3, (num_cameras, 2), dtype=jnp.float32)

    std_vector = jnp.array([position_noise_std] * 3 + [orientation_noise_std] * 3,
                           dtype=jnp.float32)
    noise_tv = jax.random.normal(k4, (num_cameras, 6), dtype=jnp.float32) * std_vector
    pose_noise = exp_map_SE3_jax(noise_tv)                     # [num_cameras,3,4]

    pose, distortion, delta_ints = camera_optimizer_forward(
        indices, pose_adjustment, pose_noise, distortion_adjustment, intrinsic_adjustment
    )
    jax.block_until_ready((pose, distortion, delta_ints))

    # Pure-JAX reference of the torch forward semantics.
    pose_a = exp_map_SO3xR3_ref(pose_adjustment[indices, :])
    pose_b = pose_noise[indices, :, :]
    pose_ref = functools.reduce(multiply_ref, [pose_a, pose_b])
    dist_ref = distortion_adjustment[indices, :]
    ints_ref = intrinsic_adjustment[indices, :]

    np.testing.assert_allclose(np.asarray(pose), np.asarray(pose_ref), rtol=1e-5, atol=1e-6)
    np.testing.assert_allclose(np.asarray(distortion), np.asarray(dist_ref), rtol=1e-6, atol=1e-7)
    np.testing.assert_allclose(np.asarray(delta_ints), np.asarray(ints_ref), rtol=1e-6, atol=1e-7)

    n = indices.shape[0]
    assert pose.shape == (n, 3, 4) and distortion.shape == (n, 6) and delta_ints.shape == (n, 2)


if __name__ == "__main__":
    key = jax.random.PRNGKey(0)
    k_small, k_mid, k_big, k_idx1, k_idx2 = jax.random.split(key, 5)

    # Small case (single 128-lane group, S == full extent).
    indices_small = jnp.array([3, 0, 7, 12, 5, 9, 1, 15], dtype=jnp.int32)
    _run_case(k_small, num_cameras=16, indices=indices_small)

    # Medium case: nb=11 -> S=8, padded to 16 groups, 2 parallel grid steps.
    indices_mid = jax.random.randint(k_idx1, (1300,), 0, 32, dtype=jnp.int32)
    _run_case(k_mid, num_cameras=32, indices=indices_mid)

    # Larger case: nb=40 -> S=16 (2 chunks per tile), padded to 48, 3 grid steps.
    indices_big = jax.random.randint(k_idx2, (5000,), 0, 64, dtype=jnp.int32)
    _run_case(k_big, num_cameras=64, indices=indices_big)

    print("KERNEL_OK")
</pallas_src>

<mosaic_0001>
module attributes {stable_mosaic.version = 11 : i64} {
  func.func @_camera_opt_kernel(%arg0: i32, %arg1: memref<18x1x128xf32, #tpu.memory_space<vmem>>, %arg2: memref<12x1x128xf32, #tpu.memory_space<vmem>>) attributes {dimension_semantics = [#tpu.dimension_semantics<parallel>], iteration_bounds = array<i64: 1>, scalar_prefetch = 0 : i64, scratch_operands = 0 : i64, tpu.core_type = #tpu.core_type<tc>, window_params = [{transform_indices = @transform_0, window_bounds = array<i64: 18, 1, 128>}, {transform_indices = @transform_1, window_bounds = array<i64: 12, 1, 128>}]} {
    %c0 = arith.constant 0 : index
    %c0_0 = arith.constant 0 : index
    %c0_1 = arith.constant 0 : index
    %0 = vector.load %arg1[%c0, %c0_0, %c0_1] : memref<18x1x128xf32, #tpu.memory_space<vmem>>, vector<1x1x128xf32>
    %1 = vector.shape_cast %0 : vector<1x1x128xf32> to vector<1x128xf32>
    %c1 = arith.constant 1 : index
    %c0_2 = arith.constant 0 : index
    %c0_3 = arith.constant 0 : index
    %2 = vector.load %arg1[%c1, %c0_2, %c0_3] : memref<18x1x128xf32, #tpu.memory_space<vmem>>, vector<1x1x128xf32>
    %3 = vector.shape_cast %2 : vector<1x1x128xf32> to vector<1x128xf32>
    %c2 = arith.constant 2 : index
    %c0_4 = arith.constant 0 : index
    %c0_5 = arith.constant 0 : index
    %4 = vector.load %arg1[%c2, %c0_4, %c0_5] : memref<18x1x128xf32, #tpu.memory_space<vmem>>, vector<1x1x128xf32>
    %5 = vector.shape_cast %4 : vector<1x1x128xf32> to vector<1x128xf32>
    %c3 = arith.constant 3 : index
    %c0_6 = arith.constant 0 : index
    %c0_7 = arith.constant 0 : index
    %6 = vector.load %arg1[%c3, %c0_6, %c0_7] : memref<18x1x128xf32, #tpu.memory_space<vmem>>, vector<1x1x128xf32>
    %7 = vector.shape_cast %6 : vector<1x1x128xf32> to vector<1x128xf32>
    %c4 = arith.constant 4 : index
    %c0_8 = arith.constant 0 : index
    %c0_9 = arith.constant 0 : index
    %8 = vector.load %arg1[%c4, %c0_8, %c0_9] : memref<18x1x128xf32, #tpu.memory_space<vmem>>, vector<1x1x128xf32>
    %9 = vector.shape_cast %8 : vector<1x1x128xf32> to vector<1x128xf32>
    %c5 = arith.constant 5 : index
    %c0_10 = arith.constant 0 : index
    %c0_11 = arith.constant 0 : index
    %10 = vector.load %arg1[%c5, %c0_10, %c0_11] : memref<18x1x128xf32, #tpu.memory_space<vmem>>, vector<1x1x128xf32>
    %11 = vector.shape_cast %10 : vector<1x1x128xf32> to vector<1x128xf32>
    %12 = arith.mulf %7, %7 : vector<1x128xf32>
    %13 = arith.mulf %9, %9 : vector<1x128xf32>
    %14 = arith.addf %12, %13 : vector<1x128xf32>
    %15 = arith.mulf %11, %11 : vector<1x128xf32>
    %16 = arith.addf %14, %15 : vector<1x128xf32>
    %17 = math.sqrt %16 : vector<1x128xf32>
    %cst = arith.constant 0.00999999977 : f32
    %18 = vector.broadcast %cst : f32 to vector<1x128xf32>
    %19 = arith.cmpf olt, %17, %18 : vector<1x128xf32>
    %cst_12 = arith.constant 1.000000e+00 : f32
    %20 = vector.broadcast %cst_12 : f32 to vector<1x128xf32>
    %21 = arith.select %19, %20, %17 : vector<1x128xi1>, vector<1x128xf32>
    %22 = tpu.reciprocal %21 : vector<1x128xf32> -> vector<1x128xf32>
    %23 = arith.mulf %22, %22 : vector<1x128xf32>
    %cst_13 = arith.constant 0.0416666679 : f32
    %24 = vector.broadcast %cst_13 : f32 to vector<1x128xf32>
    %25 = arith.mulf %16, %24 : vector<1x128xf32>
    %cst_14 = arith.constant 5.000000e-01 : f32
    %26 = vector.broadcast %cst_14 : f32 to vector<1x128xf32>
    %27 = arith.subf %26, %25 : vector<1x128xf32>
    %28 = arith.mulf %16, %27 : vector<1x128xf32>
    %cst_15 = arith.constant 1.000000e+00 : f32
    %29 = vector.broadcast %cst_15 : f32 to vector<1x128xf32>
    %30 = arith.subf %29, %28 : vector<1x128xf32>
    %31 = math.cos %17 : vector<1x128xf32>
    %32 = arith.select %19, %30, %31 : vector<1x128xi1>, vector<1x128xf32>
    %cst_16 = arith.constant 5.000000e-01 : f32
    %33 = vector.broadcast %cst_16 : f32 to vector<1x128xf32>
    %34 = arith.mulf %33, %32 : vector<1x128xf32>
    %cst_17 = arith.constant 5.000000e-01 : f32
    %35 = vector.broadcast %cst_17 : f32 to vector<1x128xf32>
    %36 = arith.addf %34, %35 : vector<1x128xf32>
    %37 = math.sin %17 : vector<1x128xf32>
    %38 = arith.mulf %37, %22 : vector<1x128xf32>
    %39 = arith.select %19, %36, %38 : vector<1x128xi1>, vector<1x128xf32>
    %cst_18 = arith.constant 5.000000e-01 : f32
    %40 = vector.broadcast %cst_18 : f32 to vector<1x128xf32>
    %41 = arith.mulf %40, %39 : vector<1x128xf32>
    %cst_19 = arith.constant 1.000000e+00 : f32
    %42 = vector.broadcast %cst_19 : f32 to vector<1x128xf32>
    %43 = arith.subf %42, %32 : vector<1x128xf32>
    %44 = arith.mulf %43, %23 : vector<1x128xf32>
    %45 = arith.select %19, %41, %44 : vector<1x128xi1>, vector<1x128xf32>
    %46 = arith.mulf %39, %7 : vector<1x128xf32>
    %47 = arith.mulf %39, %9 : vector<1x128xf32>
    %48 = arith.mulf %39, %11 : vector<1x128xf32>
    %49 = arith.mulf %45, %7 : vector<1x128xf32>
    %50 = arith.mulf %45, %9 : vector<1x128xf32>
    %51 = arith.mulf %45, %11 : vector<1x128xf32>
    %52 = arith.mulf %49, %7 : vector<1x128xf32>
    %53 = arith.addf %52, %32 : vector<1x128xf32>
    %54 = arith.mulf %49, %9 : vector<1x128xf32>
    %55 = arith.subf %54, %48 : vector<1x128xf32>
    %56 = arith.mulf %49, %11 : vector<1x128xf32>
    %57 = arith.addf %56, %47 : vector<1x128xf32>
    %58 = arith.mulf %50, %7 : vector<1x128xf32>
    %59 = arith.addf %58, %48 : vector<1x128xf32>
    %60 = arith.mulf %50, %9 : vector<1x128xf32>
    %61 = arith.addf %60, %32 : vector<1x128xf32>
    %62 = arith.mulf %50, %11 : vector<1x128xf32>
    %63 = arith.subf %62, %46 : vector<1x128xf32>
    %64 = arith.mulf %51, %7 : vector<1x128xf32>
    %65 = arith.subf %64, %47 : vector<1x128xf32>
    %66 = arith.mulf %51, %9 : vector<1x128xf32>
    %67 = arith.addf %66, %46 : vector<1x128xf32>
    %68 = arith.mulf %51, %11 : vector<1x128xf32>
    %69 = arith.addf %68, %32 : vector<1x128xf32>
    %c6 = arith.constant 6 : index
    %c0_20 = arith.constant 0 : index
    %c0_21 = arith.constant 0 : index
    %70 = vector.load %arg1[%c6, %c0_20, %c0_21] : memref<18x1x128xf32, #tpu.memory_space<vmem>>, vector<1x1x128xf32>
    %71 = vector.shape_cast %70 : vector<1x1x128xf32> to vector<1x128xf32>
    %c10 = arith.constant 10 : index
    %c0_22 = arith.constant 0 : index
    %c0_23 = arith.constant 0 : index
    %72 = vector.load %arg1[%c10, %c0_22, %c0_23] : memref<18x1x128xf32, #tpu.memory_space<vmem>>, vector<1x1x128xf32>
    %73 = vector.shape_cast %72 : vector<1x1x128xf32> to vector<1x128xf32>
    %c14 = arith.constant 14 : index
    %c0_24 = arith.constant 0 : index
    %c0_25 = arith.constant 0 : index
    %74 = vector.load %arg1[%c14, %c0_24, %c0_25] : memref<18x1x128xf32, #tpu.memory_space<vmem>>, vector<1x1x128xf32>
    %75 = vector.shape_cast %74 : vector<1x1x128xf32> to vector<1x128xf32>
    %76 = arith.mulf %53, %71 : vector<1x128xf32>
    %77 = arith.mulf %55, %73 : vector<1x128xf32>
    %78 = arith.addf %76, %77 : vector<1x128xf32>
    %79 = arith.mulf %57, %75 : vector<1x128xf32>
    %80 = arith.addf %78, %79 : vector<1x128xf32>
    %c0_26 = arith.constant 0 : index
    %c0_27 = arith.constant 0 : index
    %c0_28 = arith.constant 0 : index
    %81 = vector.load %arg2[%c0_26, %c0_27, %c0_28] : memref<12x1x128xf32, #tpu.memory_space<vmem>>, vector<1x1x128xf32>
    %82 = vector.shape_cast %81 : vector<1x1x128xf32> to vector<1x128xf32>
    %83 = vector.shape_cast %80 : vector<1x128xf32> to vector<1x1x128xf32>
    tpu.vector_store %arg2[%c0_26, %c0_27, %c0_28], %83 {strides = array<i32>} : memref<12x1x128xf32, #tpu.memory_space<vmem>>, vector<1x1x128xf32>,
    %84 = arith.mulf %59, %71 : vector<1x128xf32>
    %85 = arith.mulf %61, %73 : vector<1x128xf32>
    %86 = arith.addf %84, %85 : vector<1x128xf32>
    %87 = arith.mulf %63, %75 : vector<1x128xf32>
    %88 = arith.addf %86, %87 : vector<1x128xf32>
    %c4_29 = arith.constant 4 : index
    %c0_30 = arith.constant 0 : index
    %c0_31 = arith.constant 0 : index
    %89 = vector.load %arg2[%c4_29, %c0_30, %c0_31] : memref<12x1x128xf32, #tpu.memory_space<vmem>>, vector<1x1x128xf32>
    %90 = vector.shape_cast %89 : vector<1x1x128xf32> to vector<1x128xf32>
    %91 = vector.shape_cast %88 : vector<1x128xf32> to vector<1x1x128xf32>
    tpu.vector_store %arg2[%c4_29, %c0_30, %c0_31], %91 {strides = array<i32>} : memref<12x1x128xf32, #tpu.memory_space<vmem>>, vector<1x1x128xf32>,
    %92 = arith.mulf %65, %71 : vector<1x128xf32>
    %93 = arith.mulf %67, %73 : vector<1x128xf32>
    %94 = arith.addf %92, %93 : vector<1x128xf32>
    %95 = arith.mulf %69, %75 : vector<1x128xf32>
    %96 = arith.addf %94, %95 : vector<1x128xf32>
    %c8 = arith.constant 8 : index
    %c0_32 = arith.constant 0 : index
    %c0_33 = arith.constant 0 : index
    %97 = vector.load %arg2[%c8, %c0_32, %c0_33] : memref<12x1x128xf32, #tpu.memory_space<vmem>>, vector<1x1x128xf32>
    %98 = vector.shape_cast %97 : vector<1x1x128xf32> to vector<1x128xf32>
    %99 = vector.shape_cast %96 : vector<1x128xf32> to vector<1x1x128xf32>
    tpu.vector_store %arg2[%c8, %c0_32, %c0_33], %99 {strides = array<i32>} : memref<12x1x128xf32, #tpu.memory_space<vmem>>, vector<1x1x128xf32>,
    %c7 = arith.constant 7 : index
    %c0_34 = arith.constant 0 : index
    %c0_35 = arith.constant 0 : index
    %100 = vector.load %arg1[%c7, %c0_34, %c0_35] : memref<18x1x128xf32, #tpu.memory_space<vmem>>, vector<1x1x128xf32>
    %101 = vector.shape_cast %100 : vector<1x1x128xf32> to vector<1x128xf32>
    %c11 = arith.constant 11 : index
    %c0_36 = arith.constant 0 : index
    %c0_37 = arith.constant 0 : index
    %102 = vector.load %arg1[%c11, %c0_36, %c0_37] : memref<18x1x128xf32, #tpu.memory_space<vmem>>, vector<1x1x128xf32>
    %103 = vector.shape_cast %102 : vector<1x1x128xf32> to vector<1x128xf32>
    %c15 = arith.constant 15 : index
    %c0_38 = arith.constant 0 : index
    %c0_39 = arith.constant 0 : index
    %104 = vector.load %arg1[%c15, %c0_38, %c0_39] : memref<18x1x128xf32, #tpu.memory_space<vmem>>, vector<1x1x128xf32>
    %105 = vector.shape_cast %104 : vector<1x1x128xf32> to vector<1x128xf32>
    %106 = arith.mulf %53, %101 : vector<1x128xf32>
    %107 = arith.mulf %55, %103 : vector<1x128xf32>
    %108 = arith.addf %106, %107 : vector<1x128xf32>
    %109 = arith.mulf %57, %105 : vector<1x128xf32>
    %110 = arith.addf %108, %109 : vector<1x128xf32>
    %c1_40 = arith.constant 1 : index
    %c0_41 = arith.constant 0 : index
    %c0_42 = arith.constant 0 : index
    %111 = vector.load %arg2[%c1_40, %c0_41, %c0_42] : memref<12x1x128xf32, #tpu.memory_space<vmem>>, vector<1x1x128xf32>
    %112 = vector.shape_cast %111 : vector<1x1x128xf32> to vector<1x128xf32>
    %113 = vector.shape_cast %110 : vector<1x128xf32> to vector<1x1x128xf32>
    tpu.vector_store %arg2[%c1_40, %c0_41, %c0_42], %113 {strides = array<i32>} : memref<12x1x128xf32, #tpu.memory_space<vmem>>, vector<1x1x128xf32>,
    %114 = arith.mulf %59, %101 : vector<1x128xf32>
    %115 = arith.mulf %61, %103 : vector<1x128xf32>
    %116 = arith.addf %114, %115 : vector<1x128xf32>
    %117 = arith.mulf %63, %105 : vector<1x128xf32>
    %118 = arith.addf %116, %117 : vector<1x128xf32>
    %c5_43 = arith.constant 5 : index
    %c0_44 = arith.constant 0 : index
    %c0_45 = arith.constant 0 : index
    %119 = vector.load %arg2[%c5_43, %c0_44, %c0_45] : memref<12x1x128xf32, #tpu.memory_space<vmem>>, vector<1x1x128xf32>
    %120 = vector.shape_cast %119 : vector<1x1x128xf32> to vector<1x128xf32>
    %121 = vector.shape_cast %118 : vector<1x128xf32> to vector<1x1x128xf32>
    tpu.vector_store %arg2[%c5_43, %c0_44, %c0_45], %121 {strides = array<i32>} : memref<12x1x128xf32, #tpu.memory_space<vmem>>, vector<1x1x128xf32>,
    %122 = arith.mulf %65, %101 : vector<1x128xf32>
    %123 = arith.mulf %67, %103 : vector<1x128xf32>
    %124 = arith.addf %122, %123 : vector<1x128xf32>
    %125 = arith.mulf %69, %105 : vector<1x128xf32>
    %126 = arith.addf %124, %125 : vector<1x128xf32>
    %c9 = arith.constant 9 : index
    %c0_46 = arith.constant 0 : index
    %c0_47 = arith.constant 0 : index
    %127 = vector.load %arg2[%c9, %c0_46, %c0_47] : memref<12x1x128xf32, #tpu.memory_space<vmem>>, vector<1x1x128xf32>
    %128 = vector.shape_cast %127 : vector<1x1x128xf32> to vector<1x128xf32>
    %129 = vector.shape_cast %126 : vector<1x128xf32> to vector<1x1x128xf32>
    tpu.vector_store %arg2[%c9, %c0_46, %c0_47], %129 {strides = array<i32>} : memref<12x1x128xf32, #tpu.memory_space<vmem>>, vector<1x1x128xf32>,
    %c8_48 = arith.constant 8 : index
    %c0_49 = arith.constant 0 : index
    %c0_50 = arith.constant 0 : index
    %130 = vector.load %arg1[%c8_48, %c0_49, %c0_50] : memref<18x1x128xf32, #tpu.memory_space<vmem>>, vector<1x1x128xf32>
    %131 = vector.shape_cast %130 : vector<1x1x128xf32> to vector<1x128xf32>
    %c12 = arith.constant 12 : index
    %c0_51 = arith.constant 0 : index
    %c0_52 = arith.constant 0 : index
    %132 = vector.load %arg1[%c12, %c0_51, %c0_52] : memref<18x1x128xf32, #tpu.memory_space<vmem>>, vector<1x1x128xf32>
    %133 = vector.shape_cast %132 : vector<1x1x128xf32> to vector<1x128xf32>
    %c16 = arith.constant 16 : index
    %c0_53 = arith.constant 0 : index
    %c0_54 = arith.constant 0 : index
    %134 = vector.load %arg1[%c16, %c0_53, %c0_54] : memref<18x1x128xf32, #tpu.memory_space<vmem>>, vector<1x1x128xf32>
    %135 = vector.shape_cast %134 : vector<1x1x128xf32> to vector<1x128xf32>
    %136 = arith.mulf %53, %131 : vector<1x128xf32>
    %137 = arith.mulf %55, %133 : vector<1x128xf32>
    %138 = arith.addf %136, %137 : vector<1x128xf32>
    %139 = arith.mulf %57, %135 : vector<1x128xf32>
    %140 = arith.addf %138, %139 : vector<1x128xf32>
    %c2_55 = arith.constant 2 : index
    %c0_56 = arith.constant 0 : index
    %c0_57 = arith.constant 0 : index
    %141 = vector.load %arg2[%c2_55, %c0_56, %c0_57] : memref<12x1x128xf32, #tpu.memory_space<vmem>>, vector<1x1x128xf32>
    %142 = vector.shape_cast %141 : vector<1x1x128xf32> to vector<1x128xf32>
    %143 = vector.shape_cast %140 : vector<1x128xf32> to vector<1x1x128xf32>
    tpu.vector_store %arg2[%c2_55, %c0_56, %c0_57], %143 {strides = array<i32>} : memref<12x1x128xf32, #tpu.memory_space<vmem>>, vector<1x1x128xf32>,
    %144 = arith.mulf %59, %131 : vector<1x128xf32>
    %145 = arith.mulf %61, %133 : vector<1x128xf32>
    %146 = arith.addf %144, %145 : vector<1x128xf32>
    %147 = arith.mulf %63, %135 : vector<1x128xf32>
    %148 = arith.addf %146, %147 : vector<1x128xf32>
    %c6_58 = arith.constant 6 : index
    %c0_59 = arith.constant 0 : index
    %c0_60 = arith.constant 0 : index
    %149 = vector.load %arg2[%c6_58, %c0_59, %c0_60] : memref<12x1x128xf32, #tpu.memory_space<vmem>>, vector<1x1x128xf32>
    %150 = vector.shape_cast %149 : vector<1x1x128xf32> to vector<1x128xf32>
    %151 = vector.shape_cast %148 : vector<1x128xf32> to vector<1x1x128xf32>
    tpu.vector_store %arg2[%c6_58, %c0_59, %c0_60], %151 {strides = array<i32>} : memref<12x1x128xf32, #tpu.memory_space<vmem>>, vector<1x1x128xf32>,
    %152 = arith.mulf %65, %131 : vector<1x128xf32>
    %153 = arith.mulf %67, %133 : vector<1x128xf32>
    %154 = arith.addf %152, %153 : vector<1x128xf32>
    %155 = arith.mulf %69, %135 : vector<1x128xf32>
    %156 = arith.addf %154, %155 : vector<1x128xf32>
    %c10_61 = arith.constant 10 : index
    %c0_62 = arith.constant 0 : index
    %c0_63 = arith.constant 0 : index
    %157 = vector.load %arg2[%c10_61, %c0_62, %c0_63] : memref<12x1x128xf32, #tpu.memory_space<vmem>>, vector<1x1x128xf32>
    %158 = vector.shape_cast %157 : vector<1x1x128xf32> to vector<1x128xf32>
    %159 = vector.shape_cast %156 : vector<1x128xf32> to vector<1x1x128xf32>
    tpu.vector_store %arg2[%c10_61, %c0_62, %c0_63], %159 {strides = array<i32>} : memref<12x1x128xf32, #tpu.memory_space<vmem>>, vector<1x1x128xf32>,
    %c9_64 = arith.constant 9 : index
    %c0_65 = arith.constant 0 : index
    %c0_66 = arith.constant 0 : index
    %160 = vector.load %arg1[%c9_64, %c0_65, %c0_66] : memref<18x1x128xf32, #tpu.memory_space<vmem>>, vector<1x1x128xf32>
    %161 = vector.shape_cast %160 : vector<1x1x128xf32> to vector<1x128xf32>
    %c13 = arith.constant 13 : index
    %c0_67 = arith.constant 0 : index
    %c0_68 = arith.constant 0 : index
    %162 = vector.load %arg1[%c13, %c0_67, %c0_68] : memref<18x1x128xf32, #tpu.memory_space<vmem>>, vector<1x1x128xf32>
    %163 = vector.shape_cast %162 : vector<1x1x128xf32> to vector<1x128xf32>
    %c17 = arith.constant 17 : index
    %c0_69 = arith.constant 0 : index
    %c0_70 = arith.constant 0 : index
    %164 = vector.load %arg1[%c17, %c0_69, %c0_70] : memref<18x1x128xf32, #tpu.memory_space<vmem>>, vector<1x1x128xf32>
    %165 = vector.shape_cast %164 : vector<1x1x128xf32> to vector<1x128xf32>
    %166 = arith.mulf %53, %161 : vector<1x128xf32>
    %167 = arith.addf %1, %166 : vector<1x128xf32>
    %168 = arith.mulf %55, %163 : vector<1x128xf32>
    %169 = arith.addf %167, %168 : vector<1x128xf32>
    %170 = arith.mulf %57, %165 : vector<1x128xf32>
    %171 = arith.addf %169, %170 : vector<1x128xf32>
    %c3_71 = arith.constant 3 : index
    %c0_72 = arith.constant 0 : index
    %c0_73 = arith.constant 0 : index
    %172 = vector.load %arg2[%c3_71, %c0_72, %c0_73] : memref<12x1x128xf32, #tpu.memory_space<vmem>>, vector<1x1x128xf32>
    %173 = vector.shape_cast %172 : vector<1x1x128xf32> to vector<1x128xf32>
    %174 = vector.shape_cast %171 : vector<1x128xf32> to vector<1x1x128xf32>
    tpu.vector_store %arg2[%c3_71, %c0_72, %c0_73], %174 {strides = array<i32>} : memref<12x1x128xf32, #tpu.memory_space<vmem>>, vector<1x1x128xf32>,
    %175 = arith.mulf %59, %161 : vector<1x128xf32>
    %176 = arith.addf %3, %175 : vector<1x128xf32>
    %177 = arith.mulf %61, %163 : vector<1x128xf32>
    %178 = arith.addf %176, %177 : vector<1x128xf32>
    %179 = arith.mulf %63, %165 : vector<1x128xf32>
    %180 = arith.addf %178, %179 : vector<1x128xf32>
    %c7_74 = arith.constant 7 : index
    %c0_75 = arith.constant 0 : index
    %c0_76 = arith.constant 0 : index
    %181 = vector.load %arg2[%c7_74, %c0_75, %c0_76] : memref<12x1x128xf32, #tpu.memory_space<vmem>>, vector<1x1x128xf32>
    %182 = vector.shape_cast %181 : vector<1x1x128xf32> to vector<1x128xf32>
    %183 = vector.shape_cast %180 : vector<1x128xf32> to vector<1x1x128xf32>
    tpu.vector_store %arg2[%c7_74, %c0_75, %c0_76], %183 {strides = array<i32>} : memref<12x1x128xf32, #tpu.memory_space<vmem>>, vector<1x1x128xf32>,
    %184 = arith.mulf %65, %161 : vector<1x128xf32>
    %185 = arith.addf %5, %184 : vector<1x128xf32>
    %186 = arith.mulf %67, %163 : vector<1x128xf32>
    %187 = arith.addf %185, %186 : vector<1x128xf32>
    %188 = arith.mulf %69, %165 : vector<1x128xf32>
    %189 = arith.addf %187, %188 : vector<1x128xf32>
    %c11_77 = arith.constant 11 : index
    %c0_78 = arith.constant 0 : index
    %c0_79 = arith.constant 0 : index
    %190 = vector.load %arg2[%c11_77, %c0_78, %c0_79] : memref<12x1x128xf32, #tpu.memory_space<vmem>>, vector<1x1x128xf32>
    %191 = vector.shape_cast %190 : vector<1x1x128xf32> to vector<1x128xf32>
    %192 = vector.shape_cast %189 : vector<1x128xf32> to vector<1x1x128xf32>
    tpu.vector_store %arg2[%c11_77, %c0_78, %c0_79], %192 {strides = array<i32>} : memref<12x1x128xf32, #tpu.memory_space<vmem>>, vector<1x1x128xf32>,
    return
  }
  func.func @transform_0(%arg0: i32) -> (i32, i32, i32) {
    %c0_i32 = arith.constant 0 : i32
    %c0_i32_0 = arith.constant 0 : i32
    %c0_i32_1 = arith.constant 0 : i32
    return %c0_i32, %arg0, %c0_i32_0 : i32, i32, i32
  }
  func.func @transform_1(%arg0: i32) -> (i32, i32, i32) {
    %c0_i32 = arith.constant 0 : i32
    %c0_i32_0 = arith.constant 0 : i32
    %c0_i32_1 = arith.constant 0 : i32
    return %c0_i32, %arg0, %c0_i32_0 : i32, i32, i32
  }
}

</mosaic_0001>

<bundles_post_ra>
// kernel: tpu_custom_call.1
= control target key start
LH: loop header
LB: loop body
LE: loop exit
PB: predicated region body
PF: predicated region fallthrough
CT: control target
= control target key end

     0   :  { %6 = vsyncpa [#allocation3], 0  ;;  %s805_s0 = inlined_call_operand.hbm [shape: f32[18,1,128], index: 0, kind: input, shape index: {}]   ;;  %s806_s1 = inlined_call_operand.hbm [shape: f32[12,1,128], index: 1, kind: output, shape index: {}]  }
   0x1   :  { %7 = vsyncpa [#allocation4], 0  ;;  %s12_s8 = sshll.u32 %s805_s0, 4  ;;  %s618_s9 = smov [#allocation2]   ;;  %s13_s8 = int_to_ptr.hbm [resolvable:$true] %s12_s8 }
   0x2   :  { %s14_s10 = sshll.u32 %s618_s9, 4  ;;  %s619_s11 = smov 16   ;;  %s15_s10 = int_to_ptr.vmem [resolvable:$true] %s14_s10 }
   0x3   :  { %s620_s12 = smov 1  }
   0x4   :  { %20 = dma.hbm_to_vmem [thread:$0]  %s13_s8, 288, %s15_s10, [#allocation3], %s619_s11, %s619_s11, %s620_s12  }
   0x5   :  { %614 = dma.done.wait [#allocation3], 288  }
   0x6   :  { %615 = vsyncadd [#allocation3], 4294967008  ;;  %v645_v0 = vld [vmem:[#allocation2 + $0x3] sm:$0x1]  ;;  %v647_v1 = vld [vmem:[#allocation2 + $0x4] sm:$0x1] }
   0x7   :  { %v649_v2 = vld [vmem:[#allocation2 + $0x5] sm:$0x1]  ;;  %v36_v3 = vmul.f32 %v645_v0, %v645_v0  ;;  %v37_v4 = vmul.f32 %v647_v1, %v647_v1  ;;  %v621_v29 = vmov 683565275   ;;  %v622_v31 = vmov 2475754826  }
   0x8   :  { %v39_v5 = vmul.f32 %v649_v2, %v649_v2  ;;  %v623_v33 = vmov 2131351028   ;;  %v624_v35 = vmov 2102212464   ;;  %v625_v37 = vmov 920167782  }
   0x9   :  { %v38_v6 = vadd.f32 %v37_v4, %v36_v3  ;;  %v626_v43 = vmov 1326507024   ;;  %s628_s0 = smov [#allocation5]   ;;  %s532_s16 = sshll.u32 %s806_s1, 4  ;;  %s533_s16 = int_to_ptr.hbm [resolvable:$true] %s532_s16 }
   0xa   :  { %s530_s13 = sshll.u32 %s628_s0, 4  ;;  %s531_s13 = int_to_ptr.vmem [resolvable:$true] %s530_s13 }
   0xb   :  { %v657_v7 = vadd.f32 %v39_v5, %v38_v6 }
   0xd   :  { %562 = vrsqrt.f32 %v657_v7  ;;  %vm48_vm0 = vcmp.eq.f32.partialorder %v657_v7, inf  ;;  %v51_v14 = vand.u32 2147483648, %v657_v7  ;;  %vm50_vm1 = vcmp.eq.f32.partialorder %v657_v7, 0.0 }
  0x13   :  { %v563_v8 = vpop.eup %562 }
  0x14   :  { %v42_v9 = vmul.f32 %v563_v8, %v657_v7 }
  0x16   :  { %v43_v10 = vmul.f32 %v563_v8, %v42_v9 }
  0x18   :  { %v44_v11 = vmul.f32 0.5, %v43_v10 }
  0x1a   :  { %v45_v12 = vsub.f32 1.5, %v44_v11 }
  0x1c   :  { %v46_v13 = vmul.f32 %v563_v8, %v45_v12 }
  0x1e   :  { %v47_v15 = vmul.f32 %v46_v13, %v657_v7 }
  0x20   :  { %v49_v16 = vsel %vm48_vm0, %v657_v7, %v47_v15 }
  0x21   :  { %v666_v17 = vsel %vm50_vm1, %v51_v14, %v49_v16 }
  0x22   :  { %v77_v18 = vand.u32 2139095040, %v666_v17  ;;  %v74_v20 = vand.u32 2147483647, %v666_v17  ;;  %vm53_vm14 = vcmp.lt.f32.partialorder %v666_v17, 0.01  ;;  %vm76_vm15 = vcmp.lt.s32.totalorder %v666_v17, 0 }
  0x24   :  { %v78_v19 = vshrl.u32 %v77_v18, 23  ;;  %v81_v23 = vand.u32 8388607, %v74_v20  ;;  %vm75_vm0 = vcmp.le.f32.partialorder %v74_v20, 0.7853982 }
  0x26   :  { %v545_v21 = vadd.s32 4294967169, %v78_v19  ;;  %v82_v27 = vor.u32 8388608, %v81_v23  ;;  %v627_v23 = vmov 0  }
  0x28   :  { %v84_v22 = vadd.s32 1, %v545_v21  ;;  %v675_v47 = vshll.u32 %v82_v27, 8 }
  0x2a   :  { %vm85_vm2 = vcmp.gt.s32.totalorder %v84_v22, 0  ;;  %v123_v57 = vand.u32 65535, %v675_v47  ;;  %v124_v58 = vshrl.u32 %v675_v47, 16 }
  0x2b   :  { %v86_v24 = vsel %vm85_vm2, %v84_v22, 0 }
  0x2c   :  { %v88_v25 = vand.u32 31, %v86_v24  ;;  %v672_v26 = vshrl.u32 %v86_v24, 5 }
  0x2e   :  { %v89_v28 = vsub.s32 32, %v88_v25  ;;  %v91_v30 = vshll.u32 %v621_v29, %v88_v25  ;;  %v94_v32 = vshll.u32 %v622_v31, %v88_v25  ;;  %v97_v34 = vshll.u32 %v623_v33, %v88_v25 }
  0x2f   :  { %v100_v36 = vshll.u32 %v624_v35, %v88_v25  ;;  %v103_v38 = vshll.u32 %v625_v37, %v88_v25  ;;  %vm106_vm3 = vcmp.lt.s32.totalorder %v672_v26, 1  ;;  %vm108_vm4 = vcmp.lt.s32.totalorder %v672_v26, 3 }
  0x30   :  { %v92_v39 = vshrl.u32 %v622_v31, %v89_v28  ;;  %v95_v40 = vshrl.u32 %v623_v33, %v89_v28  ;;  %v98_v41 = vshrl.u32 %v624_v35, %v89_v28  ;;  %v101_v42 = vshrl.u32 %v625_v37, %v89_v28 }
  0x31   :  { %v104_v44 = vshrl.u32 %v626_v43, %v89_v28  ;;  %vm107_vm5 = vcmp.lt.s32.totalorder %v672_v26, 2  ;;  %vm109_vm6 = vcmp.lt.s32.totalorder %v672_v26, 4  ;;  %v90_v4 = vshrl.u32 %v621_v29, %v89_v28 }
  0x32   :  { %v93_v45 = vor.u32 %v92_v39, %v91_v30  ;;  %v96_v46 = vor.u32 %v95_v40, %v94_v32  ;;  %v99_v48 = vor.u32 %v98_v41, %v97_v34  ;;  %v102_v49 = vor.u32 %v101_v42, %v100_v36 }
  0x33   :  { %v105_v50 = vor.u32 %v104_v44, %v103_v38 }
  0x34   :  { %v114_v51 = vsel %vm106_vm3, %v93_v45, %v96_v46  ;;  %v115_v52 = vsel %vm109_vm6, %v102_v49, 920167782  ;;  %v118_v53 = vsel %vm106_vm3, %v96_v46, %v99_v48  ;;  %v110_v19 = vsel %vm106_vm3, %v90_v4, %v93_v45 }
  0x35   :  { %v119_v54 = vsel %vm109_vm6, %v105_v50, 1326507024  ;;  %v116_v55 = vsel %vm108_vm4, %v99_v48, %v115_v52  ;;  %v111_v22 = vsel %vm109_vm6, %v99_v48, 2102212464 }
  0x36   :  { %v120_v56 = vsel %vm108_vm4, %v102_v49, %v119_v54  ;;  %v117_v59 = vsel %vm107_vm5, %v114_v51, %v116_v55  ;;  %v112_v33 = vsel %vm108_vm4, %v96_v46, %v111_v22 }
  0x37   :  { %v121_v60 = vsel %vm107_vm5, %v118_v53, %v120_v56  ;;  %v147_v63 = vand.u32 65535, %v117_v59  ;;  %v148_v3 = vshrl.u32 %v117_v59, 16  ;;  %v113_v41 = vsel %vm107_vm5, %v110_v19, %v112_v33 }
  0x38   :  { %v125_v61 = vand.u32 65535, %v121_v60  ;;  %v126_v62 = vshrl.u32 %v121_v60, 16  ;;  %v167_v45 = vmul.u32 %v675_v47, %v113_v41 }
  0x39   :  { %v149_v9 = vmul.u32 %v147_v63, %v123_v57  ;;  %v150_v10 = vmul.u32 %v148_v3, %v123_v57  ;;  %v151_v11 = vmul.u32 %v147_v63, %v124_v58  ;;  %v152_v15 = vmul.u32 %v148_v3, %v124_v58 }
  0x3a   :  { %v127_v5 = vmul.u32 %v125_v61, %v123_v57  ;;  %v128_v6 = vmul.u32 %v126_v62, %v123_v57  ;;  %v129_v8 = vmul.u32 %v125_v61, %v124_v58  ;;  %v130_v12 = vmul.u32 %v126_v62, %v124_v58 }
  0x3b   :  { %v153_v16 = vshll.u32 %v150_v10, 16  ;;  %v155_v18 = vshll.u32 %v151_v11, 16  ;;  %v154_v31 = vshrl.u32 %v150_v10, 16  ;;  %v156_v37 = vshrl.u32 %v151_v11, 16 }
  0x3c   :  { %v131_v13 = vshll.u32 %v128_v6, 16  ;;  %v133_v14 = vshll.u32 %v129_v8, 16  ;;  %v132_v27 = vshrl.u32 %v128_v6, 16  ;;  %v134_v34 = vshrl.u32 %v129_v8, 16 }
  0x3d   :  { %vm157_vm8 = vc.u32 %v149_v9, %v153_v16  ;;  %v159_v25 = vadd.s32 %v153_v16, %v149_v9  ;;  %v54_v63 = vsel %vm53_vm14, 1.0, %v666_v17 }
  0x3e   :  { %vm135_vm7 = vc.u32 %v127_v5, %v131_v13  ;;  %v137_v21 = vadd.s32 %v131_v13, %v127_v5  ;;  %v158_v29 = vsel %vm157_vm8, 1, %v627_v23  ;;  %564 = vrcp.f32 %v54_v63 }
  0x3f   :  { %v136_v24 = vsel %vm135_vm7, 1, %v627_v23  ;;  %v160_v32 = vadd.s32 %v158_v29, %v152_v15  ;;  %vm161_vm10 = vc.u32 %v159_v25, %v155_v18  ;;  %v163_v40 = vadd.s32 %v159_v25, %v155_v18 }
  0x40   :  { %v138_v28 = vadd.s32 %v136_v24, %v130_v12  ;;  %vm139_vm9 = vc.u32 %v137_v21, %v133_v14  ;;  %v162_v36 = vsel %vm161_vm10, 1, %v627_v23  ;;  %v70_v24 = vmul.f32 0.041666668, %v657_v7 }
  0x41   :  { %v140_v30 = vsel %vm139_vm9, 1, %v627_v23  ;;  %v164_v38 = vadd.s32 %v162_v36, %v160_v32  ;;  %vm60_vm1 = vweird.f32 %v54_v63  ;;  %v64_v36 = vand.u32 2147483647, %v54_v63 }
  0x42   :  { %v142_v35 = vadd.s32 %v140_v30, %v138_v28  ;;  %v71_v20 = vsub.f32 0.5, %v70_v24 }
  0x43   :  { %v165_v42 = vadd.s32 %v164_v38, %v154_v31  ;;  %vm65_vm6 = vcmp.eq.f32.partialorder %v64_v36, 8.507059e+37 }
  0x44   :  { %v143_v39 = vadd.s32 %v142_v35, %v132_v27  ;;  %v565_v11 = vpop.eup %564 }
  0x45   :  { %v166_v44 = vadd.s32 %v165_v42, %v156_v37  ;;  %v56_v14 = vmul.f32 %v565_v11, %v54_v63  ;;  %vm61_vm2 = vweird.f32 %v565_v11  ;;  %v66_v37 = vand.u32 2147483648, %v54_v63 }
  0x46   :  { %v144_v43 = vadd.s32 %v143_v39, %v134_v34  ;;  %vm716_vm3 = vmor %vm60_vm1, %vm61_vm2 }
  0x47   :  { %v170_v48 = vadd.s32 1, %v166_v44  ;;  %v57_v23 = vsub.f32 1.0, %v56_v14 }
  0x48   :  { %vm169_vm11 = vc.u32 %v144_v43, %v163_v40  ;;  %v168_v26 = vadd.s32 %v163_v40, %v144_v43 }
  0x49   :  { %v171_v49 = vsel %vm169_vm11, %v170_v48, %v166_v44  ;;  %v58_v31 = vmul.f32 %v565_v11, %v57_v23  ;;  %v72_v44 = vmul.f32 %v71_v20, %v657_v7  ;;  %vm217_vm11 = vweird.f32 %v666_v17 }
  0x4a   :  { %v172_v50 = vadd.s32 %v171_v49, %v167_v45  ;;  %v67_v45 = vor.u32 1.1754944e-38, %v66_v37 }
  0x4b   :  { %v59_v40 = vadd.f32 %v565_v11, %v58_v31 }
  0x4c   :  { %v173_v46 = vadd.s32 536870912, %v172_v50 }
  0x4e   :  { %v174_v51 = vshrl.u32 %v173_v46, 30 }
  0x50   :  { %v175_v52 = vshll.u32 %v174_v51, 30  ;;  %v198_v10 = vsub.s32 4, %v174_v51 }
  0x52   :  { %v176_v53 = vsub.s32 %v172_v50, %v175_v52  ;;  %v199_v15 = vsel %vm76_vm15, %v198_v10, %v174_v51  ;;  %v63_v50 = vsel %vm716_vm3, %v565_v11, %v59_v40 }
  0x53   :  { %v201_v19 = vsel %vm75_vm0, 0, %v199_v15  ;;  %v68_v7 = vsel %vm65_vm6, %v67_v45, %v63_v50 }
  0x54   :  { %vm177_vm12 = vcmp.lt.s32.totalorder %v176_v53, 0  ;;  %v178_v54 = vsub.s32 0, %v176_v53  ;;  %v375_v28 = vadd.s32 3, %v201_v19  ;;  %v218_v34 = vand.u32 3, %v201_v19  ;;  %v419_v19 = vld [vmem:[#allocation2 + $0xa] sm:$0x1] }
  0x56   :  { %v179_v55 = vsel %vm177_vm12, %v178_v54, %v176_v53  ;;  %v376_v35 = vand.u32 3, %v375_v28  ;;  %vm223_vm4 = vcmp.eq.s32.totalorder %v218_v34, 2  ;;  %vm219_vm7 = vcmp.lt.s32.totalorder %v218_v34, 2 }
  0x57   :  { %v180_v56 = vclz %v179_v55  ;;  %vm220_vm8 = vcmp.eq.s32.totalorder %v218_v34, 0  ;;  %v443_v34 = vld [vmem:[#allocation2 + $0x7] sm:$0x1] }
  0x58   :  { %vm381_vm5 = vcmp.eq.s32.totalorder %v376_v35, 2  ;;  %vm378_vm9 = vcmp.eq.s32.totalorder %v376_v35, 0  ;;  %vm377_vm10 = vcmp.lt.s32.totalorder %v376_v35, 2 }
  0x59   :  { %v546_v57 = vadd.s32 4294967294, %v180_v56 }
  0x5b   :  { %vm547_vm13 = vcmp.lt.s32.totalorder %v546_v57, 0 }
  0x5c   :  { %v183_v58 = vsel %vm547_vm13, 0, %v546_v57 }
  0x5d   :  { %v184_v59 = vsub.s32 32, %v183_v58  ;;  %v185_v47 = vshll.u32 %v176_v53, %v183_v58  ;;  %v188_v60 = vsub.s32 4294967266, %v183_v58  ;;  %v73_v53 = vsub.f32 1.0, %v72_v44 }
  0x5f   :  { %v186_v61 = vshrl.u32 %v168_v26, %v184_v59  ;;  %v189_v62 = vadd.s32 127, %v188_v60  ;;  %v69_v59 = vmul.f32 %v68_v7, %v68_v7 }
  0x61   :  { %v187_v3 = vor.u32 %v186_v61, %v185_v47  ;;  %v190_v4 = vshll.u32 %v189_v62, 23 }
  0x63   :  { %v191_v5 = vor.u32 4788187, %v190_v4  ;;  %v194_v6 = vcvt.s32.f32 %v187_v3 }
  0x65   :  { %v192_v8 = vand.u32 2147483647, %v191_v5 }
  0x67   :  { %v195_v9 = vmul.f32 %v194_v6, %v192_v8 }
  0x69   :  { %v196_v12 = vxor.u32 2147483648, %v195_v9 }
  0x6b   :  { %v197_v13 = vsel %vm76_vm15, %v196_v12, %v195_v9 }
  0x6c   :  { %v200_v16 = vsel %vm75_vm0, %v666_v17, %v197_v13 }
  0x6d   :  { %v202_v18 = vmul.f32 %v200_v16, %v200_v16 }
  0x6f   :  { %v203_v21 = vmul.f32 -0.001358992, %v202_v18  ;;  %v210_v22 = vmul.f32 -0.00019511016, %v202_v18 }
  0x71   :  { %v204_v25 = vadd.f32 0.041655596, %v203_v21  ;;  %v211_v27 = vadd.f32 0.008332121, %v210_v22  ;;  %v421_v21 = vld [vmem:[#allocation2 + $0xe] sm:$0x1] }
  0x73   :  { %v205_v29 = vmul.f32 %v204_v25, %v202_v18  ;;  %v212_v30 = vmul.f32 %v211_v27, %v202_v18 }
  0x75   :  { %v206_v32 = vadd.f32 -0.4999988, %v205_v29  ;;  %v213_v33 = vadd.f32 -0.16666654, %v212_v30 }
  0x77   :  { %v207_v38 = vmul.f32 %v206_v32, %v202_v18  ;;  %v214_v39 = vmul.f32 %v213_v33, %v202_v18  ;;  %v417_v18 = vld [vmem:[#allocation2 + $0x6] sm:$0x1] }
  0x79   :  { %v208_v42 = vadd.f32 1.0, %v207_v38  ;;  %v215_v43 = vadd.f32 1.0, %v214_v39  ;;  %v447_v38 = vld [vmem:[#allocation2 + $0xf] sm:$0x1] }
  0x7b   :  { %v216_v48 = vmul.f32 %v215_v43, %v200_v16  ;;  %v224_v49 = vxor.u32 2147483648, %v208_v42 }
  0x7d   :  { %v221_v46 = vxor.u32 2147483648, %v216_v48  ;;  %v225_v51 = vsel %vm223_vm4, %v224_v49, %v216_v48  ;;  %v383_v52 = vsel %vm381_vm5, %v224_v49, %v216_v48 }
  0x7f   :  { %v222_v54 = vsel %vm220_vm8, %v208_v42, %v221_v46  ;;  %v380_v55 = vsel %vm378_vm9, %v208_v42, %v221_v46 }
  0x80   :  { %v226_v56 = vsel %vm219_vm7, %v222_v54, %v225_v51  ;;  %v384_v57 = vsel %vm377_vm10, %v380_v55, %v383_v52  ;;  %v470_v54 = vld [vmem:[#allocation2 + $0x8] sm:$0x1]  ;;  %v472_v55 = vld [vmem:[#allocation2 + $0xc] sm:$0x1] }
  0x81   :  { %v227_v26 = vsel %vm217_vm11, nan, %v226_v56  ;;  %v385_v58 = vsel %vm217_vm11, nan, %v384_v57  ;;  %v474_v56 = vld [vmem:[#allocation2 + $0x10] sm:$0x1] }
  0x82   :  { %v228_v47 = vsel %vm53_vm14, %v73_v53, %v227_v26  ;;  %v386_v61 = vmul.f32 %v385_v58, %v68_v7 }
  0x83   :  { %v229_v60 = vmul.f32 0.5, %v228_v47  ;;  %v389_v62 = vsub.f32 1.0, %v228_v47 }
  0x85   :  { %v230_v63 = vadd.f32 0.5, %v229_v60  ;;  %v390_v3 = vmul.f32 %v389_v62, %v69_v59 }
  0x87   :  { %v387_v4 = vsel %vm53_vm14, %v230_v63, %v386_v61 }
  0x88   :  { %v388_v5 = vmul.f32 0.5, %v387_v4  ;;  %v394_v8 = vmul.f32 %v387_v4, %v649_v2  ;;  %v393_v12 = vmul.f32 %v387_v4, %v647_v1  ;;  %v392_v13 = vmul.f32 %v387_v4, %v645_v0 }
  0x8a   :  { %v391_v6 = vsel %vm53_vm14, %v388_v5, %v390_v3 }
  0x8b   :  { %v395_v9 = vmul.f32 %v391_v6, %v645_v0  ;;  %v396_v10 = vmul.f32 %v391_v6, %v647_v1  ;;  %v397_v11 = vmul.f32 %v391_v6, %v649_v2  ;;  %v497_v6 = vld [vmem:[#allocation2 + $0x9] sm:$0x1] }
  0x8d   :  { %v398_v14 = vmul.f32 %v395_v9, %v645_v0  ;;  %v400_v15 = vmul.f32 %v395_v9, %v647_v1  ;;  %v402_v16 = vmul.f32 %v395_v9, %v649_v2  ;;  %v404_v17 = vmul.f32 %v396_v10, %v645_v0 }
  0x8e   :  { %v406_v22 = vmul.f32 %v396_v10, %v647_v1  ;;  %v408_v23 = vmul.f32 %v396_v10, %v649_v2  ;;  %v410_v24 = vmul.f32 %v397_v11, %v645_v0  ;;  %v412_v25 = vmul.f32 %v397_v11, %v647_v1  ;;  %v445_v0 = vld [vmem:[#allocation2 + $0xb] sm:$0x1] }
  0x8f   :  { %v744_v27 = vadd.f32 %v398_v14, %v228_v47  ;;  %v746_v28 = vsub.f32 %v400_v15, %v394_v8  ;;  %v748_v29 = vadd.f32 %v402_v16, %v393_v12  ;;  %v750_v30 = vadd.f32 %v404_v17, %v394_v8 }
  0x90   :  { %v752_v31 = vadd.f32 %v406_v22, %v228_v47  ;;  %v754_v20 = vsub.f32 %v408_v23, %v392_v13  ;;  %v756_v32 = vsub.f32 %v410_v24, %v393_v12  ;;  %v758_v33 = vadd.f32 %v412_v25, %v392_v13  ;;  %v499_v12 = vld [vmem:[#allocation2 + $0xd] sm:$0x1]  ;;  %v501_v13 = vld [vmem:[#allocation2 + $0x11] sm:$0x1] }
  0x91   :  { %v422_v1 = vmul.f32 %v417_v18, %v744_v27  ;;  %v423_v35 = vmul.f32 %v419_v19, %v746_v28  ;;  %v425_v36 = vmul.f32 %v421_v21, %v748_v29  ;;  %v428_v37 = vmul.f32 %v417_v18, %v750_v30 }
  0x92   :  { %v429_v39 = vmul.f32 %v419_v19, %v752_v31  ;;  %v431_v40 = vmul.f32 %v421_v21, %v754_v20  ;;  %v414_v41 = vmul.f32 %v397_v11, %v649_v2  ;;  %v435_v42 = vmul.f32 %v417_v18, %v756_v32  ;;  %v25_v18 = vld [vmem:[#allocation2] sm:$0x1] }
  0x93   :  { %v424_v43 = vadd.f32 %v423_v35, %v422_v1  ;;  %v436_v44 = vmul.f32 %v419_v19, %v758_v33  ;;  %v448_v45 = vmul.f32 %v443_v34, %v744_v27  ;;  %v449_v48 = vmul.f32 %v445_v0, %v746_v28  ;;  %v27_v1 = vld [vmem:[#allocation2 + $0x1] sm:$0x1] }
  0x94   :  { %v430_v49 = vadd.f32 %v429_v39, %v428_v37  ;;  %v771_v50 = vadd.f32 %v414_v41, %v228_v47  ;;  %v451_v46 = vmul.f32 %v447_v38, %v748_v29  ;;  %v455_v51 = vmul.f32 %v443_v34, %v750_v30  ;;  %v29_v39 = vld [vmem:[#allocation2 + $0x2] sm:$0x1] }
  0x95   :  { %v426_v52 = vadd.f32 %v425_v36, %v424_v43  ;;  %v437_v53 = vadd.f32 %v436_v44, %v435_v42  ;;  %v450_v7 = vadd.f32 %v449_v48, %v448_v45  ;;  %v456_v2 = vmul.f32 %v445_v0, %v752_v31 }
  0x96   :  { %v432_v57 = vadd.f32 %v431_v40, %v430_v49  ;;  %v438_v26 = vmul.f32 %v421_v21, %v771_v50  ;;  %v458_v58 = vmul.f32 %v447_v38, %v754_v20  ;;  %v462_v59 = vmul.f32 %v443_v34, %v756_v32 }
  0x97   :  { %427 = vst [vmem:[#allocation5] sm:$0x1] %v426_v52  ;;  %v452_v47 = vadd.f32 %v451_v46, %v450_v7  ;;  %v457_v60 = vadd.f32 %v456_v2, %v455_v51  ;;  %v463_v61 = vmul.f32 %v445_v0, %v758_v33  ;;  %v465_v62 = vmul.f32 %v447_v38, %v771_v50 }
  0x98   :  { %434 = vst [vmem:[#allocation5 + $0x4] sm:$0x1] %v432_v57  ;;  %v439_v63 = vadd.f32 %v438_v26, %v437_v53  ;;  %v475_v3 = vmul.f32 %v470_v54, %v744_v27  ;;  %v476_v4 = vmul.f32 %v472_v55, %v746_v28  ;;  %v478_v5 = vmul.f32 %v474_v56, %v748_v29 }
  0x99   :  { %454 = vst [vmem:[#allocation5 + $0x1] sm:$0x1] %v452_v47  ;;  %v459_v8 = vadd.f32 %v458_v58, %v457_v60  ;;  %v464_v9 = vadd.f32 %v463_v61, %v462_v59  ;;  %v482_v10 = vmul.f32 %v470_v54, %v750_v30  ;;  %v483_v11 = vmul.f32 %v472_v55, %v752_v31 }
  0x9a   :  { %441 = vst [vmem:[#allocation5 + $0x8] sm:$0x1] %v439_v63  ;;  %v477_v14 = vadd.f32 %v476_v4, %v475_v3  ;;  %v485_v15 = vmul.f32 %v474_v56, %v754_v20  ;;  %v489_v16 = vmul.f32 %v470_v54, %v756_v32  ;;  %v490_v17 = vmul.f32 %v472_v55, %v758_v33 }
  0x9b   :  { %461 = vst [vmem:[#allocation5 + $0x5] sm:$0x1] %v459_v8  ;;  %v466_v19 = vadd.f32 %v465_v62, %v464_v9  ;;  %v484_v21 = vadd.f32 %v483_v11, %v482_v10  ;;  %v492_v22 = vmul.f32 %v474_v56, %v771_v50  ;;  %v502_v23 = vmul.f32 %v497_v6, %v744_v27 }
  0x9c   :  { %v479_v24 = vadd.f32 %v478_v5, %v477_v14  ;;  %v491_v25 = vadd.f32 %v490_v17, %v489_v16  ;;  %v504_v34 = vmul.f32 %v499_v12, %v746_v28  ;;  %v506_v0 = vmul.f32 %v501_v13, %v748_v29 }
  0x9d   :  { %468 = vst [vmem:[#allocation5 + $0x9] sm:$0x1] %v466_v19  ;;  %v486_v35 = vadd.f32 %v485_v15, %v484_v21  ;;  %v503_v36 = vadd.f32 %v502_v23, %v25_v18  ;;  %v510_v37 = vmul.f32 %v497_v6, %v750_v30  ;;  %v512_v38 = vmul.f32 %v499_v12, %v752_v31 }
  0x9e   :  { %481 = vst [vmem:[#allocation5 + $0x2] sm:$0x1] %v479_v24  ;;  %v493_v40 = vadd.f32 %v492_v22, %v491_v25  ;;  %v518_v41 = vmul.f32 %v497_v6, %v756_v32  ;;  %v520_v27 = vmul.f32 %v499_v12, %v758_v33  ;;  %v514_v29 = vmul.f32 %v501_v13, %v754_v20 }
  0x9f   :  { %488 = vst [vmem:[#allocation5 + $0x6] sm:$0x1] %v486_v35  ;;  %v505_v42 = vadd.f32 %v504_v34, %v503_v36  ;;  %v511_v28 = vadd.f32 %v510_v37, %v27_v1  ;;  %v522_v44 = vmul.f32 %v501_v13, %v771_v50 }
  0xa0   :  { %495 = vst [vmem:[#allocation5 + $0xa] sm:$0x1] %v493_v40  ;;  %v519_v43 = vadd.f32 %v518_v41, %v29_v39 }
  0xa1   :  { %v507_v45 = vadd.f32 %v506_v0, %v505_v42  ;;  %v513_v30 = vadd.f32 %v512_v38, %v511_v28 }
  0xa2   :  { %v521_v31 = vadd.f32 %v520_v27, %v519_v43 }
  0xa3   :  { %509 = vst [vmem:[#allocation5 + $0x3] sm:$0x1] %v507_v45  ;;  %v515_v32 = vadd.f32 %v514_v29, %v513_v30 }
  0xa4   :  { %v523_v33 = vadd.f32 %v522_v44, %v521_v31 }
  0xa5   :  { %517 = vst [vmem:[#allocation5 + $0x7] sm:$0x1] %v515_v32 }
  0xa6   :  { %525 = vst [vmem:[#allocation5 + $0xb] sm:$0x1] %v523_v33 }
  0xa7   :  { %538 = dma.vmem_to_hbm [thread:$0]  %s531_s13, 192, %s533_s16, [#allocation4], %s619_s11, %s619_s11, %s620_s12  }
  0xa8   :  { %616 = dma.done.wait [#allocation4], 192  }
  0xa9   :  { %617 = vsyncadd [#allocation4], 4294967104 }
  0xaa   :  { %543 = vsyncpa [#allocation3], 1 }
  0xab   :  { %544 = vsyncpa [#allocation4], 1 }

</bundles_post_ra>
